<compile_context>
chip_gen: v7x
topology: tpu7x:2x2x1
jax: 0.10.0
libtpu: 0.0.40
codegen_flags: <defaults>
</compile_context>

<pallas_src>
import functools

import jax
import jax.numpy as jnp
from jax.experimental import pallas as pl
from jax.experimental.pallas import tpu as pltpu


SEQ_VOCAB = 64
STRUCT_VOCAB = 4096 + 5

_SUBLANE = 8               # rows per dense (8, d) store group
_TOKEN_TILE = 2048         # max tokens per grid step (review: 1024-4096)
_DEFAULT_VMEM = 64 << 20   # v7x per-TensorCore VMEM (smallest across gens)
_VMEM_HEADROOM = 8 << 20   # leave room for Mosaic internals
_VMEM_SLACK = 2 << 20


def _round_up(x, m):
    return ((x + m - 1) // m) * m


def _encode_kernel(seq_ids_ref, struct_ids_ref, seq_tab_ref, struct_tab_ref,
                   out_ref):
    # seq_ids_ref / struct_ids_ref : SMEM int32 [padded_n]   (scalar prefetch)
    # seq_tab_ref                  : VMEM [seq_vocab, d]     (resident)
    # struct_tab_ref               : VMEM [struct_vocab, d]  (resident)
    # out_ref                      : VMEM [tm, d]
    tm = out_ref.shape[0]
    base = pl.program_id(0) * tm
    out_dtype = out_ref.dtype

    def body(g, carry):
        row0 = pl.multiple_of(g * _SUBLANE, _SUBLANE)
        rows = []
        for u in range(_SUBLANE):                 # manual unroll for ILP
            r = row0 + u
            sid = seq_ids_ref[base + r]
            tid = struct_ids_ref[base + r]
            seq_row = seq_tab_ref[pl.ds(sid, 1), :].astype(out_dtype)
            struct_row = struct_tab_ref[pl.ds(tid, 1), :].astype(out_dtype)
            rows.append(seq_row + struct_row)
        # One dense (8, d) store per group instead of 8 masked single-sublane
        # stores (v5e has a single vst slot per bundle; concat rides the XLU).
        out_ref[pl.ds(row0, _SUBLANE), :] = jnp.concatenate(rows, axis=0)
        return carry

    jax.lax.fori_loop(0, tm // _SUBLANE, body, 0)


@functools.partial(jax.jit, static_argnames=("single_buffer_tables",))
def _encode_impl(sequence_tokens, structure_tokens, seq_table, struct_table,
                 *, single_buffer_tables=True):
    b, l = sequence_tokens.shape
    seq_vocab, d = seq_table.shape
    struct_vocab = struct_table.shape[0]
    n = b * l

    out_dtype = jnp.promote_types(seq_table.dtype, struct_table.dtype)
    row_bytes = d * jnp.dtype(out_dtype).itemsize
    tbl_bytes = (seq_vocab * d * jnp.dtype(seq_table.dtype).itemsize
                 + struct_vocab * d * jnp.dtype(struct_table.dtype).itemsize)
    tbl_resident = tbl_bytes if single_buffer_tables else 2 * tbl_bytes

    # Generation-aware VMEM budget (v7x has only 64 MiB per TensorCore).
    try:
        vmem_cap = int(pltpu.get_tpu_info().vmem_capacity_bytes)
    except Exception:  # pragma: no cover - conservative fallback
        vmem_cap = _DEFAULT_VMEM
    vmem_budget = max(16 << 20, vmem_cap - _VMEM_HEADROOM)

    # Token tile: as big as VMEM allows (tables resident + double-buffered
    # output tile), capped at _TOKEN_TILE, and capped at ceil(n/2) so the grid
    # keeps >= 2 parallel steps for v7x's two TensorCores.
    avail = vmem_budget - tbl_resident - _VMEM_SLACK
    tm_vmem = max(_SUBLANE,
                  (avail // max(1, 2 * row_bytes)) // _SUBLANE * _SUBLANE)
    two_way = _round_up(max(1, (n + 1) // 2), _SUBLANE)
    tm = max(_SUBLANE, min(_TOKEN_TILE, tm_vmem, two_way))

    num_tiles = -(-n // tm)
    padded_n = num_tiles * tm

    # Flatten + pad the token ids (padded slots point at row 0, a valid row;
    # their output rows fall past n and are clipped by Pallas on writeback).
    seq_flat = sequence_tokens.reshape(n).astype(jnp.int32)
    struct_flat = structure_tokens.reshape(n).astype(jnp.int32)
    if padded_n != n:
        pad = padded_n - n
        seq_flat = jnp.concatenate([seq_flat, jnp.zeros((pad,), jnp.int32)])
        struct_flat = jnp.concatenate([struct_flat,
                                       jnp.zeros((pad,), jnp.int32)])

    vmem_need = tbl_resident + 2 * tm * row_bytes + _VMEM_SLACK
    vmem_limit = int(min(vmem_budget, max(vmem_need, 32 << 20)))

    cost = pl.CostEstimate(
        flops=n * d,                               # one add per output element
        transcendentals=0,
        bytes_accessed=tbl_bytes + n * row_bytes + 2 * padded_n * 4)

    tbl_spec_kwargs = {}
    if single_buffer_tables:
        # Constant index_map -> the tables are DMA'd once; one buffer suffices.
        tbl_spec_kwargs = dict(pipeline_mode=pl.Buffered(1))

    grid_spec = pltpu.PrefetchScalarGridSpec(
        num_scalar_prefetch=2,                     # seq_ids, struct_ids -> SMEM
        grid=(num_tiles,),
        in_specs=[
            pl.BlockSpec((seq_vocab, d), lambda i, *_: (0, 0),
                         **tbl_spec_kwargs),
            pl.BlockSpec((struct_vocab, d), lambda i, *_: (0, 0),
                         **tbl_spec_kwargs),
        ],
        out_specs=pl.BlockSpec((tm, d), lambda i, *_: (i, 0)),
    )

    out = pl.pallas_call(
        _encode_kernel,
        out_shape=jax.ShapeDtypeStruct((n, d), out_dtype),
        grid_spec=grid_spec,
        compiler_params=pltpu.CompilerParams(
            dimension_semantics=("parallel",),
            vmem_limit_bytes=vmem_limit),
        cost_estimate=cost,
    )(seq_flat, struct_flat, seq_table, struct_table)

    return out.reshape(b, l, d)


def coflow_encode_inputs(sequence_tokens, structure_tokens, seq_table,
                         struct_table):
    """sequence_tokens, structure_tokens: [B, L] int ids (assumed in range,
    like nn.Embedding). seq_table: [64, D]. struct_table: [4101, D].
    Returns [B, L, D] in the promoted table dtype."""
    try:
        return _encode_impl(sequence_tokens, structure_tokens, seq_table,
                            struct_table, single_buffer_tables=True)
    except Exception:
        # Fallback for Pallas builds that reject pipeline_mode=pl.Buffered(1)
        # on a resident input block; identical semantics, default buffering.
        return _encode_impl(sequence_tokens, structure_tokens, seq_table,
                            struct_table, single_buffer_tables=False)


def _reference(sequence_tokens, structure_tokens, seq_table, struct_table):
    return (jnp.take(seq_table, sequence_tokens, axis=0)
            + jnp.take(struct_table, structure_tokens, axis=0))


if __name__ == "__main__":
    key = jax.random.PRNGKey(0)
    k_seq_tab, k_struct_tab, k_seq_tok, k_struct_tok = jax.random.split(key, 4)

    B, L, D = 2, 8, 32

    # nn.Embedding default init: N(0, 1).
    seq_table = jax.random.normal(k_seq_tab, (SEQ_VOCAB, D), dtype=jnp.float32)
    struct_table = jax.random.normal(k_struct_tab, (STRUCT_VOCAB, D),
                                     dtype=jnp.float32)

    sequence_tokens = jax.random.randint(k_seq_tok, (B, L), 0, SEQ_VOCAB,
                                         dtype=jnp.int32)
    structure_tokens = jax.random.randint(k_struct_tok, (B, L), 0,
                                          STRUCT_VOCAB, dtype=jnp.int32)

    out = coflow_encode_inputs(sequence_tokens, structure_tokens, seq_table,
                               struct_table)
    out = jax.block_until_ready(out)

    ref = _reference(sequence_tokens, structure_tokens, seq_table,
                     struct_table)
    assert out.shape == (B, L, D)
    assert jnp.allclose(out, ref, atol=1e-6, rtol=1e-6)

    print("KERNEL_OK")
</pallas_src>

<mosaic_0001>
module attributes {stable_mosaic.version = 11 : i64} {
  func.func @_encode_kernel(%arg0: i32, %arg1: memref<16xi32, #tpu.memory_space<smem>>, %arg2: memref<16xi32, #tpu.memory_space<smem>>, %arg3: memref<64x32xf32, #tpu.memory_space<vmem>>, %arg4: memref<4101x32xf32, #tpu.memory_space<vmem>>, %arg5: memref<8x32xf32, #tpu.memory_space<vmem>>) attributes {dimension_semantics = [#tpu.dimension_semantics<parallel>], iteration_bounds = array<i64: 2>, scalar_prefetch = 2 : i64, scratch_operands = 0 : i64, tpu.core_type = #tpu.core_type<tc>, window_params = [{pipeline_mode = #tpu.pipeline_mode<synchronous>, transform_indices = @transform_0, window_bounds = array<i64: 64, 32>}, {pipeline_mode = #tpu.pipeline_mode<synchronous>, transform_indices = @transform_1, window_bounds = array<i64: 4101, 32>}, {transform_indices = @transform_2, window_bounds = array<i64: 8, 32>}]} {
    %c8_i32 = arith.constant 8 : i32
    %0 = arith.muli %arg0, %c8_i32 : i32
    %c0_i32 = arith.constant 0 : i32
    %c8_i32_0 = arith.constant 8 : i32
    %1 = arith.muli %c0_i32, %c8_i32_0 : i32
    %2 = tpu.assume_multiple %1, 8 : i32
    %c0_i32_1 = arith.constant 0 : i32
    %3 = arith.addi %2, %c0_i32_1 : i32
    %4 = arith.addi %0, %3 : i32
    %5 = arith.index_cast %4 : i32 to index
    %6 = memref.load %arg1[%5] : memref<16xi32, #tpu.memory_space<smem>>
    %7 = arith.addi %0, %3 : i32
    %8 = arith.index_cast %7 : i32 to index
    %9 = memref.load %arg2[%8] : memref<16xi32, #tpu.memory_space<smem>>
    %10 = arith.index_cast %6 : i32 to index
    %c0 = arith.constant 0 : index
    %11 = vector.load %arg3[%10, %c0] : memref<64x32xf32, #tpu.memory_space<vmem>>, vector<1x32xf32>
    %12 = arith.index_cast %9 : i32 to index
    %c0_2 = arith.constant 0 : index
    %13 = vector.load %arg4[%12, %c0_2] : memref<4101x32xf32, #tpu.memory_space<vmem>>, vector<1x32xf32>
    %14 = arith.addf %11, %13 : vector<1x32xf32>
    %c1_i32 = arith.constant 1 : i32
    %15 = arith.addi %2, %c1_i32 : i32
    %16 = arith.addi %0, %15 : i32
    %17 = arith.index_cast %16 : i32 to index
    %18 = memref.load %arg1[%17] : memref<16xi32, #tpu.memory_space<smem>>
    %19 = arith.addi %0, %15 : i32
    %20 = arith.index_cast %19 : i32 to index
    %21 = memref.load %arg2[%20] : memref<16xi32, #tpu.memory_space<smem>>
    %22 = arith.index_cast %18 : i32 to index
    %c0_3 = arith.constant 0 : index
    %23 = vector.load %arg3[%22, %c0_3] : memref<64x32xf32, #tpu.memory_space<vmem>>, vector<1x32xf32>
    %24 = arith.index_cast %21 : i32 to index
    %c0_4 = arith.constant 0 : index
    %25 = vector.load %arg4[%24, %c0_4] : memref<4101x32xf32, #tpu.memory_space<vmem>>, vector<1x32xf32>
    %26 = arith.addf %23, %25 : vector<1x32xf32>
    %c2_i32 = arith.constant 2 : i32
    %27 = arith.addi %2, %c2_i32 : i32
    %28 = arith.addi %0, %27 : i32
    %29 = arith.index_cast %28 : i32 to index
    %30 = memref.load %arg1[%29] : memref<16xi32, #tpu.memory_space<smem>>
    %31 = arith.addi %0, %27 : i32
    %32 = arith.index_cast %31 : i32 to index
    %33 = memref.load %arg2[%32] : memref<16xi32, #tpu.memory_space<smem>>
    %34 = arith.index_cast %30 : i32 to index
    %c0_5 = arith.constant 0 : index
    %35 = vector.load %arg3[%34, %c0_5] : memref<64x32xf32, #tpu.memory_space<vmem>>, vector<1x32xf32>
    %36 = arith.index_cast %33 : i32 to index
    %c0_6 = arith.constant 0 : index
    %37 = vector.load %arg4[%36, %c0_6] : memref<4101x32xf32, #tpu.memory_space<vmem>>, vector<1x32xf32>
    %38 = arith.addf %35, %37 : vector<1x32xf32>
    %c3_i32 = arith.constant 3 : i32
    %39 = arith.addi %2, %c3_i32 : i32
    %40 = arith.addi %0, %39 : i32
    %41 = arith.index_cast %40 : i32 to index
    %42 = memref.load %arg1[%41] : memref<16xi32, #tpu.memory_space<smem>>
    %43 = arith.addi %0, %39 : i32
    %44 = arith.index_cast %43 : i32 to index
    %45 = memref.load %arg2[%44] : memref<16xi32, #tpu.memory_space<smem>>
    %46 = arith.index_cast %42 : i32 to index
    %c0_7 = arith.constant 0 : index
    %47 = vector.load %arg3[%46, %c0_7] : memref<64x32xf32, #tpu.memory_space<vmem>>, vector<1x32xf32>
    %48 = arith.index_cast %45 : i32 to index
    %c0_8 = arith.constant 0 : index
    %49 = vector.load %arg4[%48, %c0_8] : memref<4101x32xf32, #tpu.memory_space<vmem>>, vector<1x32xf32>
    %50 = arith.addf %47, %49 : vector<1x32xf32>
    %c4_i32 = arith.constant 4 : i32
    %51 = arith.addi %2, %c4_i32 : i32
    %52 = arith.addi %0, %51 : i32
    %53 = arith.index_cast %52 : i32 to index
    %54 = memref.load %arg1[%53] : memref<16xi32, #tpu.memory_space<smem>>
    %55 = arith.addi %0, %51 : i32
    %56 = arith.index_cast %55 : i32 to index
    %57 = memref.load %arg2[%56] : memref<16xi32, #tpu.memory_space<smem>>
    %58 = arith.index_cast %54 : i32 to index
    %c0_9 = arith.constant 0 : index
    %59 = vector.load %arg3[%58, %c0_9] : memref<64x32xf32, #tpu.memory_space<vmem>>, vector<1x32xf32>
    %60 = arith.index_cast %57 : i32 to index
    %c0_10 = arith.constant 0 : index
    %61 = vector.load %arg4[%60, %c0_10] : memref<4101x32xf32, #tpu.memory_space<vmem>>, vector<1x32xf32>
    %62 = arith.addf %59, %61 : vector<1x32xf32>
    %c5_i32 = arith.constant 5 : i32
    %63 = arith.addi %2, %c5_i32 : i32
    %64 = arith.addi %0, %63 : i32
    %65 = arith.index_cast %64 : i32 to index
    %66 = memref.load %arg1[%65] : memref<16xi32, #tpu.memory_space<smem>>
    %67 = arith.addi %0, %63 : i32
    %68 = arith.index_cast %67 : i32 to index
    %69 = memref.load %arg2[%68] : memref<16xi32, #tpu.memory_space<smem>>
    %70 = arith.index_cast %66 : i32 to index
    %c0_11 = arith.constant 0 : index
    %71 = vector.load %arg3[%70, %c0_11] : memref<64x32xf32, #tpu.memory_space<vmem>>, vector<1x32xf32>
    %72 = arith.index_cast %69 : i32 to index
    %c0_12 = arith.constant 0 : index
    %73 = vector.load %arg4[%72, %c0_12] : memref<4101x32xf32, #tpu.memory_space<vmem>>, vector<1x32xf32>
    %74 = arith.addf %71, %73 : vector<1x32xf32>
    %c6_i32 = arith.constant 6 : i32
    %75 = arith.addi %2, %c6_i32 : i32
    %76 = arith.addi %0, %75 : i32
    %77 = arith.index_cast %76 : i32 to index
    %78 = memref.load %arg1[%77] : memref<16xi32, #tpu.memory_space<smem>>
    %79 = arith.addi %0, %75 : i32
    %80 = arith.index_cast %79 : i32 to index
    %81 = memref.load %arg2[%80] : memref<16xi32, #tpu.memory_space<smem>>
    %82 = arith.index_cast %78 : i32 to index
    %c0_13 = arith.constant 0 : index
    %83 = vector.load %arg3[%82, %c0_13] : memref<64x32xf32, #tpu.memory_space<vmem>>, vector<1x32xf32>
    %84 = arith.index_cast %81 : i32 to index
    %c0_14 = arith.constant 0 : index
    %85 = vector.load %arg4[%84, %c0_14] : memref<4101x32xf32, #tpu.memory_space<vmem>>, vector<1x32xf32>
    %86 = arith.addf %83, %85 : vector<1x32xf32>
    %c7_i32 = arith.constant 7 : i32
    %87 = arith.addi %2, %c7_i32 : i32
    %88 = arith.addi %0, %87 : i32
    %89 = arith.index_cast %88 : i32 to index
    %90 = memref.load %arg1[%89] : memref<16xi32, #tpu.memory_space<smem>>
    %91 = arith.addi %0, %87 : i32
    %92 = arith.index_cast %91 : i32 to index
    %93 = memref.load %arg2[%92] : memref<16xi32, #tpu.memory_space<smem>>
    %94 = arith.index_cast %90 : i32 to index
    %c0_15 = arith.constant 0 : index
    %95 = vector.load %arg3[%94, %c0_15] : memref<64x32xf32, #tpu.memory_space<vmem>>, vector<1x32xf32>
    %96 = arith.index_cast %93 : i32 to index
    %c0_16 = arith.constant 0 : index
    %97 = vector.load %arg4[%96, %c0_16] : memref<4101x32xf32, #tpu.memory_space<vmem>>, vector<1x32xf32>
    %98 = arith.addf %95, %97 : vector<1x32xf32>
    %99 = tpu.concatenate %14, %26, %38, %50, %62, %74, %86, %98 in 0 : vector<1x32xf32>, vector<1x32xf32>, vector<1x32xf32>, vector<1x32xf32>, vector<1x32xf32>, vector<1x32xf32>, vector<1x32xf32>, vector<1x32xf32> -> vector<8x32xf32>
    %100 = arith.index_cast %2 : i32 to index
    %c0_17 = arith.constant 0 : index
    %101 = vector.load %arg5[%100, %c0_17] : memref<8x32xf32, #tpu.memory_space<vmem>>, vector<8x32xf32>
    tpu.vector_store %arg5[%100, %c0_17], %99 {strides = array<i32>} : memref<8x32xf32, #tpu.memory_space<vmem>>, vector<8x32xf32>,
    %c1_i32_18 = arith.constant 1 : i32
    return
  }
  func.func @transform_0(%arg0: i32, %arg1: memref<16xi32, #tpu.memory_space<smem>>, %arg2: memref<16xi32, #tpu.memory_space<smem>>) -> (i32, i32) {
    %c0_i32 = arith.constant 0 : i32
    %c0_i32_0 = arith.constant 0 : i32
    %c0_i32_1 = arith.constant 0 : i32
    return %c0_i32, %c0_i32_0 : i32, i32
  }
  func.func @transform_1(%arg0: i32, %arg1: memref<16xi32, #tpu.memory_space<smem>>, %arg2: memref<16xi32, #tpu.memory_space<smem>>) -> (i32, i32) {
    %c0_i32 = arith.constant 0 : i32
    %c0_i32_0 = arith.constant 0 : i32
    %c0_i32_1 = arith.constant 0 : i32
    return %c0_i32, %c0_i32_0 : i32, i32
  }
  func.func @transform_2(%arg0: i32, %arg1: memref<16xi32, #tpu.memory_space<smem>>, %arg2: memref<16xi32, #tpu.memory_space<smem>>) -> (i32, i32) {
    %c0_i32 = arith.constant 0 : i32
    %c0_i32_0 = arith.constant 0 : i32
    return %arg0, %c0_i32 : i32, i32
  }
}

module attributes {stable_mosaic.version = 11 : i64} {
  func.func @_encode_kernel(%arg0: i32, %arg1: memref<16xi32, #tpu.memory_space<smem>>, %arg2: memref<16xi32, #tpu.memory_space<smem>>, %arg3: memref<64x32xf32, #tpu.memory_space<vmem>>, %arg4: memref<4101x32xf32, #tpu.memory_space<vmem>>, %arg5: memref<8x32xf32, #tpu.memory_space<vmem>>) attributes {dimension_semantics = [#tpu.dimension_semantics<parallel>], iteration_bounds = array<i64: 2>, scalar_prefetch = 2 : i64, scratch_operands = 0 : i64, tpu.core_type = #tpu.core_type<tc>, window_params = [{pipeline_mode = #tpu.pipeline_mode<synchronous>, transform_indices = @transform_0, window_bounds = array<i64: 64, 32>}, {pipeline_mode = #tpu.pipeline_mode<synchronous>, transform_indices = @transform_1, window_bounds = array<i64: 4101, 32>}, {transform_indices = @transform_2, window_bounds = array<i64: 8, 32>}]} {
    %c8_i32 = arith.constant 8 : i32
    %0 = arith.muli %arg0, %c8_i32 : i32
    %c0_i32 = arith.constant 0 : i32
    %c8_i32_0 = arith.constant 8 : i32
    %1 = arith.muli %c0_i32, %c8_i32_0 : i32
    %2 = tpu.assume_multiple %1, 8 : i32
    %c0_i32_1 = arith.constant 0 : i32
    %3 = arith.addi %2, %c0_i32_1 : i32
    %4 = arith.addi %0, %3 : i32
    %5 = arith.index_cast %4 : i32 to index
    %6 = memref.load %arg1[%5] : memref<16xi32, #tpu.memory_space<smem>>
    %7 = arith.addi %0, %3 : i32
    %8 = arith.index_cast %7 : i32 to index
    %9 = memref.load %arg2[%8] : memref<16xi32, #tpu.memory_space<smem>>
    %10 = arith.index_cast %6 : i32 to index
    %c0 = arith.constant 0 : index
    %11 = vector.load %arg3[%10, %c0] : memref<64x32xf32, #tpu.memory_space<vmem>>, vector<1x32xf32>
    %12 = arith.index_cast %9 : i32 to index
    %c0_2 = arith.constant 0 : index
    %13 = vector.load %arg4[%12, %c0_2] : memref<4101x32xf32, #tpu.memory_space<vmem>>, vector<1x32xf32>
    %14 = arith.addf %11, %13 : vector<1x32xf32>
    %c1_i32 = arith.constant 1 : i32
    %15 = arith.addi %2, %c1_i32 : i32
    %16 = arith.addi %0, %15 : i32
    %17 = arith.index_cast %16 : i32 to index
    %18 = memref.load %arg1[%17] : memref<16xi32, #tpu.memory_space<smem>>
    %19 = arith.addi %0, %15 : i32
    %20 = arith.index_cast %19 : i32 to index
    %21 = memref.load %arg2[%20] : memref<16xi32, #tpu.memory_space<smem>>
    %22 = arith.index_cast %18 : i32 to index
    %c0_3 = arith.constant 0 : index
    %23 = vector.load %arg3[%22, %c0_3] : memref<64x32xf32, #tpu.memory_space<vmem>>, vector<1x32xf32>
    %24 = arith.index_cast %21 : i32 to index
    %c0_4 = arith.constant 0 : index
    %25 = vector.load %arg4[%24, %c0_4] : memref<4101x32xf32, #tpu.memory_space<vmem>>, vector<1x32xf32>
    %26 = arith.addf %23, %25 : vector<1x32xf32>
    %c2_i32 = arith.constant 2 : i32
    %27 = arith.addi %2, %c2_i32 : i32
    %28 = arith.addi %0, %27 : i32
    %29 = arith.index_cast %28 : i32 to index
    %30 = memref.load %arg1[%29] : memref<16xi32, #tpu.memory_space<smem>>
    %31 = arith.addi %0, %27 : i32
    %32 = arith.index_cast %31 : i32 to index
    %33 = memref.load %arg2[%32] : memref<16xi32, #tpu.memory_space<smem>>
    %34 = arith.index_cast %30 : i32 to index
    %c0_5 = arith.constant 0 : index
    %35 = vector.load %arg3[%34, %c0_5] : memref<64x32xf32, #tpu.memory_space<vmem>>, vector<1x32xf32>
    %36 = arith.index_cast %33 : i32 to index
    %c0_6 = arith.constant 0 : index
    %37 = vector.load %arg4[%36, %c0_6] : memref<4101x32xf32, #tpu.memory_space<vmem>>, vector<1x32xf32>
    %38 = arith.addf %35, %37 : vector<1x32xf32>
    %c3_i32 = arith.constant 3 : i32
    %39 = arith.addi %2, %c3_i32 : i32
    %40 = arith.addi %0, %39 : i32
    %41 = arith.index_cast %40 : i32 to index
    %42 = memref.load %arg1[%41] : memref<16xi32, #tpu.memory_space<smem>>
    %43 = arith.addi %0, %39 : i32
    %44 = arith.index_cast %43 : i32 to index
    %45 = memref.load %arg2[%44] : memref<16xi32, #tpu.memory_space<smem>>
    %46 = arith.index_cast %42 : i32 to index
    %c0_7 = arith.constant 0 : index
    %47 = vector.load %arg3[%46, %c0_7] : memref<64x32xf32, #tpu.memory_space<vmem>>, vector<1x32xf32>
    %48 = arith.index_cast %45 : i32 to index
    %c0_8 = arith.constant 0 : index
    %49 = vector.load %arg4[%48, %c0_8] : memref<4101x32xf32, #tpu.memory_space<vmem>>, vector<1x32xf32>
    %50 = arith.addf %47, %49 : vector<1x32xf32>
    %c4_i32 = arith.constant 4 : i32
    %51 = arith.addi %2, %c4_i32 : i32
    %52 = arith.addi %0, %51 : i32
    %53 = arith.index_cast %52 : i32 to index
    %54 = memref.load %arg1[%53] : memref<16xi32, #tpu.memory_space<smem>>
    %55 = arith.addi %0, %51 : i32
    %56 = arith.index_cast %55 : i32 to index
    %57 = memref.load %arg2[%56] : memref<16xi32, #tpu.memory_space<smem>>
    %58 = arith.index_cast %54 : i32 to index
    %c0_9 = arith.constant 0 : index
    %59 = vector.load %arg3[%58, %c0_9] : memref<64x32xf32, #tpu.memory_space<vmem>>, vector<1x32xf32>
    %60 = arith.index_cast %57 : i32 to index
    %c0_10 = arith.constant 0 : index
    %61 = vector.load %arg4[%60, %c0_10] : memref<4101x32xf32, #tpu.memory_space<vmem>>, vector<1x32xf32>
    %62 = arith.addf %59, %61 : vector<1x32xf32>
    %c5_i32 = arith.constant 5 : i32
    %63 = arith.addi %2, %c5_i32 : i32
    %64 = arith.addi %0, %63 : i32
    %65 = arith.index_cast %64 : i32 to index
    %66 = memref.load %arg1[%65] : memref<16xi32, #tpu.memory_space<smem>>
    %67 = arith.addi %0, %63 : i32
    %68 = arith.index_cast %67 : i32 to index
    %69 = memref.load %arg2[%68] : memref<16xi32, #tpu.memory_space<smem>>
    %70 = arith.index_cast %66 : i32 to index
    %c0_11 = arith.constant 0 : index
    %71 = vector.load %arg3[%70, %c0_11] : memref<64x32xf32, #tpu.memory_space<vmem>>, vector<1x32xf32>
    %72 = arith.index_cast %69 : i32 to index
    %c0_12 = arith.constant 0 : index
    %73 = vector.load %arg4[%72, %c0_12] : memref<4101x32xf32, #tpu.memory_space<vmem>>, vector<1x32xf32>
    %74 = arith.addf %71, %73 : vector<1x32xf32>
    %c6_i32 = arith.constant 6 : i32
    %75 = arith.addi %2, %c6_i32 : i32
    %76 = arith.addi %0, %75 : i32
    %77 = arith.index_cast %76 : i32 to index
    %78 = memref.load %arg1[%77] : memref<16xi32, #tpu.memory_space<smem>>
    %79 = arith.addi %0, %75 : i32
    %80 = arith.index_cast %79 : i32 to index
    %81 = memref.load %arg2[%80] : memref<16xi32, #tpu.memory_space<smem>>
    %82 = arith.index_cast %78 : i32 to index
    %c0_13 = arith.constant 0 : index
    %83 = vector.load %arg3[%82, %c0_13] : memref<64x32xf32, #tpu.memory_space<vmem>>, vector<1x32xf32>
    %84 = arith.index_cast %81 : i32 to index
    %c0_14 = arith.constant 0 : index
    %85 = vector.load %arg4[%84, %c0_14] : memref<4101x32xf32, #tpu.memory_space<vmem>>, vector<1x32xf32>
    %86 = arith.addf %83, %85 : vector<1x32xf32>
    %c7_i32 = arith.constant 7 : i32
    %87 = arith.addi %2, %c7_i32 : i32
    %88 = arith.addi %0, %87 : i32
    %89 = arith.index_cast %88 : i32 to index
    %90 = memref.load %arg1[%89] : memref<16xi32, #tpu.memory_space<smem>>
    %91 = arith.addi %0, %87 : i32
    %92 = arith.index_cast %91 : i32 to index
    %93 = memref.load %arg2[%92] : memref<16xi32, #tpu.memory_space<smem>>
    %94 = arith.index_cast %90 : i32 to index
    %c0_15 = arith.constant 0 : index
    %95 = vector.load %arg3[%94, %c0_15] : memref<64x32xf32, #tpu.memory_space<vmem>>, vector<1x32xf32>
    %96 = arith.index_cast %93 : i32 to index
    %c0_16 = arith.constant 0 : index
    %97 = vector.load %arg4[%96, %c0_16] : memref<4101x32xf32, #tpu.memory_space<vmem>>, vector<1x32xf32>
    %98 = arith.addf %95, %97 : vector<1x32xf32>
    %99 = tpu.concatenate %14, %26, %38, %50, %62, %74, %86, %98 in 0 : vector<1x32xf32>, vector<1x32xf32>, vector<1x32xf32>, vector<1x32xf32>, vector<1x32xf32>, vector<1x32xf32>, vector<1x32xf32>, vector<1x32xf32> -> vector<8x32xf32>
    %100 = arith.index_cast %2 : i32 to index
    %c0_17 = arith.constant 0 : index
    %101 = vector.load %arg5[%100, %c0_17] : memref<8x32xf32, #tpu.memory_space<vmem>>, vector<8x32xf32>
    tpu.vector_store %arg5[%100, %c0_17], %99 {strides = array<i32>} : memref<8x32xf32, #tpu.memory_space<vmem>>, vector<8x32xf32>,
    %c1_i32_18 = arith.constant 1 : i32
    return
  }
  func.func @transform_0(%arg0: i32, %arg1: memref<16xi32, #tpu.memory_space<smem>>, %arg2: memref<16xi32, #tpu.memory_space<smem>>) -> (i32, i32) {
    %c0_i32 = arith.constant 0 : i32
    %c0_i32_0 = arith.constant 0 : i32
    %c0_i32_1 = arith.constant 0 : i32
    return %c0_i32, %c0_i32_0 : i32, i32
  }
  func.func @transform_1(%arg0: i32, %arg1: memref<16xi32, #tpu.memory_space<smem>>, %arg2: memref<16xi32, #tpu.memory_space<smem>>) -> (i32, i32) {
    %c0_i32 = arith.constant 0 : i32
    %c0_i32_0 = arith.constant 0 : i32
    %c0_i32_1 = arith.constant 0 : i32
    return %c0_i32, %c0_i32_0 : i32, i32
  }
  func.func @transform_2(%arg0: i32, %arg1: memref<16xi32, #tpu.memory_space<smem>>, %arg2: memref<16xi32, #tpu.memory_space<smem>>) -> (i32, i32) {
    %c0_i32 = arith.constant 0 : i32
    %c0_i32_0 = arith.constant 0 : i32
    return %arg0, %c0_i32 : i32, i32
  }
}

</mosaic_0001>

<bundles_post_ra>
// kernel: _encode_impl.1
= control target key start
LH: loop header
LB: loop body
LE: loop exit
PB: predicated region body
PF: predicated region fallthrough
CT: control target
= control target key end

     0   :  { %s656_s0 = inlined_call_operand.vmem [shape: s32[16], index: 0, kind: input, shape index: {}]   ;;  %s657_s2 = inlined_call_operand.vmem [shape: f32[64,32], index: 2, kind: input, shape index: {}]   ;;  %s658_s3 = inlined_call_operand.vmem [shape: f32[4101,32], index: 3, kind: input, shape index: {}]   ;;  %s659_s4 = inlined_call_operand.hbm [shape: f32[16,32], index: 4, kind: output, shape index: {}]   ;;  %s660_s1 = inlined_call_operand.vmem [shape: s32[16], index: 1, kind: input, shape index: {}]  }
   0x1   :  { %s9_s17 = sshll.u32 %s656_s0, 4  ;;  %s13_s20 = sshll.u32 %s660_s1, 4  ;;  %s10_s17 = int_to_ptr.vmem [resolvable:$true] %s9_s17  ;;  %s14_s20 = int_to_ptr.vmem [resolvable:$true] %s13_s20 }
   0x2   :  { %s370_s21 = scalar_lea.vmem %s10_s17, 16  ;;  %p375_p1 = scmp.lt.s32.totalorder %s10_s17, %s10_s17 }
   0x3   :  { %p371_p0 = scmp.ne.s32.totalorder %s10_s17, %s370_s21  ;;  %p376_p2 = scmp.lt.s32.totalorder %s370_s21, %s370_s21 }
   0x5   :  { %p377_p3 = por %p376_p2, %p375_p1 }
   0x7   :  { %p378_p4 = pnand %p377_p3, %p371_p0 }
   0x9   :  { %381 = shalt.err (!%p378_p4)  }
   0xa   :  { %s460_s22 = smov [#allocation3]   ;;  %s382_s23 = scalar_lea.vmem %s14_s20, 16 }
   0xb   :  { %12 = dma.vmem_to_smem %s10_s17, 16, %s460_s22, [#allocation2] }
   0xc   :  { %p383_p5 = scmp.ne.s32.totalorder %s14_s20, %s382_s23  ;;  %p387_p6 = scmp.lt.s32.totalorder %s14_s20, %s14_s20 }
   0xd   :  { %p388_p7 = scmp.lt.s32.totalorder %s382_s23, %s382_s23 }
   0xf   :  { %p389_p8 = por %p388_p7, %p387_p6 }
  0x11   :  { %p390_p9 = pnand %p389_p8, %p383_p5 }
  0x13   :  { %393 = shalt.err (!%p390_p9)  }
  0x14   :  { %s461_s0 = smov [#allocation4]  }
  0x15   :  { %16 = dma.vmem_to_smem %s14_s20, 16, %s461_s0, [#allocation2] }
  0x16   :  { %438 = dma.done.wait [#allocation2], 32 }
  0x17   :  { %439 = vsyncadd [#allocation2], 4294967264 }
  0x18   :  { %18 = sfence }
  0x19   :  { %19 = vsyncpa [#allocation6], 0 }
  0x1a   :  { %21 = vsyncpa [#allocation6 + $0x1], 0  ;;  %s494_s1 = smov 0   ;;  %s496_s24 = smov 0  }
  0x1b   :  { %s498_s25 = smov 0   ;;  %s500_s26 = smov 0  }
  0x1c LB: > { %666 = sst [smem:[#allocation9_spill]] %s446_s1  ;;  %s515_s27 = sadd.s32 4294967295, %s458_s26   ;;  %s458_s26 = sphi %s500_s26, %s677_s26   ;;  %s454_s25 = sphi %s498_s25, %s679_s25   ;;  %s450_s24 = sphi %s496_s24, %s681_s24   ;;  %s446_s1 = sphi %s494_s1, %s680_s1  }
  0x1d   : > { %667 = sst [smem:[#allocation10_spill]] %s454_s25  ;;  %s320_s28 = sadd.s32 4294967294, %s458_s26  }
  0x1e   : > { %s519_s29 = sadd.s32 1, %s458_s26   ;;  %s76_s30 = sadd.s32 1, %s454_s25 }
  0x1f   : > { %668 = sst [smem:[#allocation11_spill]] %s519_s29  ;;  %s73_s5 = ssub.s32 %s458_s26, %s519_s29 }
  0x20   : > { %p86_p10 = scmp.ne.s32.totalorder %s454_s25, %s450_s24  ;;  %p74_p11 = scmp.eq.s32.totalorder %s73_s5, 0 }
  0x21   : > { %p87_p12 = scmp.eq.s32.totalorder %s515_s27, 1  ;;  %p92_p13 = scmp.ne.s32.totalorder %s450_s24, %s446_s1 }
  0x22   : > { %p93_p0 = scmp.eq.s32.totalorder %s320_s28, 1  ;;  %p322_p3 = scmp.ge.s32.totalorder %s458_s26, 1 }
  0x23   : > { %s530_s6 = scalar_select %p74_p11, %s454_s25, %s76_s30  }
  0x24   : > { %p532_p1 = por %p87_p12, %p86_p10  ;;  %p536_p2 = por %p93_p0, %p92_p13 }
  0x25   : > { %669 = sst [smem:[#allocation12_spill]] %s530_s6  ;;  %p117_p4 = scmp.lt.s32.totalorder %s458_s26, 3 }
  0x26   : > { %s671_s8 = scalar_select %p536_p2, 1, 0 }
  0x27   : > { %p118_p5 = pnand %p322_p3, %p117_p4 }
  0x28   : > { %672 = sst [smem:[#allocation13_spill]] %s671_s8  ;;  %s543_s9 = sshll.u32 (!%p118_p5), %s515_s27, 3  ;;  %vm227_vm0 = vcmask (!%p118_p5), 1040384   ;;  %vm229_vm1 = vcmask (!%p118_p5), 1041408   ;;  %vm231_vm2 = vcmask (!%p118_p5), 1042432   ;;  %vm233_vm3 = vcmask (!%p118_p5), 1043456  }
  0x29   : > { %121 = sbr.rel (%p118_p5) target bundleno = 88 (0x58), region = 28  ;;  %s136_s10 = sld [smem:[#allocation3 + %s543_s9]] (!%p118_p5)  ;;  %vm235_vm4 = vcmask (!%p118_p5), 1044480   ;;  %vm237_vm5 = vcmask (!%p118_p5), 1045504   ;;  %vm239_vm6 = vcmask (!%p118_p5), 1046528   ;;  %vm241_vm7 = vcmask (!%p118_p5), 261120  }
  0x2a   : > { %s137_s12 = sld [smem:[#allocation4 + %s543_s9]] (!%p118_p5)  ;;  %s144_s13 = sadd.s32 (!%p118_p5), 1, %s543_s9 }
  0x2b   : > { %s153_s14 = sadd.s32 (!%p118_p5), 2, %s543_s9  ;;  %s145_s15 = sld [smem:[#allocation3 + %s144_s13]] (!%p118_p5) }
  0x2c   : > { %s146_s16 = sld [smem:[#allocation4 + %s144_s13]] (!%p118_p5)  ;;  %s162_s19 = sadd.s32 (!%p118_p5), 3, %s543_s9 }
  0x2d   : > { %s154_s17 = sld [smem:[#allocation3 + %s153_s14]] (!%p118_p5)  ;;  %s171_s20 = sadd.s32 (!%p118_p5), 4, %s543_s9 }
  0x2e   : > { %s155_s18 = sld [smem:[#allocation4 + %s153_s14]] (!%p118_p5)  ;;  %s180_s25 = sadd.s32 (!%p118_p5), 5, %s543_s9 }
  0x2f   : > { %s138_s23 = scalar_lea.vmem (!%p118_p5), %s657_s2, %s136_s10  ;;  %s163_s0 = sld [smem:[#allocation3 + %s162_s19]] (!%p118_p5) }
  0x30   : > { %s140_s5 = scalar_lea.vmem %s658_s3, %s137_s12  ;;  %s164_s11 = sld [smem:[#allocation4 + %s162_s19]]  ;;  %v139_v0 = vld [vmem:[%s138_s23] sm:$0x1] }
  0x31   : > { %v141_v1 = vld [vmem:[%s140_s5] sm:$0x1]  ;;  %s172_s6 = sld [smem:[#allocation3 + %s171_s20]]  ;;  %s147_s29 = scalar_lea.vmem %s657_s2, %s145_s15 }
  0x32   : > { %s173_s13 = sld [smem:[#allocation4 + %s171_s20]]  ;;  %s149_s10 = scalar_lea.vmem %s658_s3, %s146_s16  ;;  %v148_v2 = vld [vmem:[%s147_s29] sm:$0x1]  ;;  %v142_v4 = vadd.f32 %v141_v1, %v139_v0 }
  0x33   : > { %v150_v3 = vld [vmem:[%s149_s10] sm:$0x1]  ;;  %s156_s12 = scalar_lea.vmem %s657_s2, %s154_s17  ;;  %s189_s15 = sadd.s32 6, %s543_s9 }
  0x34   : > { %s158_s23 = scalar_lea.vmem %s658_s3, %s155_s18  ;;  %v151_v5 = vadd.f32 %v150_v3, %v148_v2  ;;  %v157_v6 = vld [vmem:[%s156_s12] sm:$0x1]  ;;  %s181_s8 = sld [smem:[#allocation3 + %s180_s25]] }
  0x35   : > { %v159_v7 = vld [vmem:[%s158_s23] sm:$0x1]  ;;  %s165_s29 = scalar_lea.vmem %s657_s2, %s163_s0  ;;  %s182_s18 = sld [smem:[#allocation4 + %s180_s25]] }
  0x36   : > { %v160_v8 = vadd.f32 %v159_v7, %v157_v6  ;;  %v166_v9 = vld [vmem:[%s165_s29] sm:$0x1]  ;;  %s167_s30 = scalar_lea.vmem %s658_s3, %s164_s11  ;;  %v207_v10 = vrot.slane %v151_v5, 7  ;;  %s190_s12 = sld [smem:[#allocation3 + %s189_s15]] }
  0x37   : > { %v168_v11 = vld [vmem:[%s167_s30] sm:$0x1]  ;;  %s174_s10 = scalar_lea.vmem %s657_s2, %s172_s6  ;;  %s191_s19 = sld [smem:[#allocation4 + %s189_s15]] }
  0x38   : > { %s176_s0 = scalar_lea.vmem %s658_s3, %s173_s13  ;;  %v210_v12 = vrot.slane %v160_v8, 6  ;;  %v169_v13 = vadd.f32 %v168_v11, %v166_v9  ;;  %v175_v14 = vld [vmem:[%s174_s10] sm:$0x1]  ;;  %v228_v16 = vsel %vm227_vm0, %v142_v4, %v207_v10  ;;  %s673_s11 = sand.u32 1, %s450_s24  }
  0x39   : > { %v177_v15 = vld [vmem:[%s176_s0] sm:$0x1]  ;;  %s586_s28 = sshll.u32 %s673_s11, 3  ;;  %s198_s23 = sadd.s32 7, %s543_s9 }
  0x3a   : > { %v178_v17 = vadd.f32 %v177_v15, %v175_v14  ;;  %v230_v18 = vsel %vm229_vm1, %v228_v16, %v210_v12  ;;  %s199_s25 = sld [smem:[#allocation3 + %s198_s23]]  ;;  %v213_v19 = vrot.slane %v169_v13, 5  ;;  %s183_s13 = scalar_lea.vmem %s657_s2, %s181_s8 }
  0x3b   : > { %s200_s6 = sld [smem:[#allocation4 + %s198_s23]]  ;;  %v184_v21 = vld [vmem:[%s183_s13] sm:$0x1]  ;;  %s185_s15 = scalar_lea.vmem %s658_s3, %s182_s18 }
  0x3c   : > { %v216_v20 = vrot.slane %v178_v17, 4  ;;  %v232_v22 = vsel %vm231_vm2, %v230_v18, %v213_v19  ;;  %v186_v23 = vld [vmem:[%s185_s15] sm:$0x1]  ;;  %s192_s30 = scalar_lea.vmem %s657_s2, %s190_s12  ;;  %s133_s12 = scalar_lea.vmem [#allocation5], %s586_s28 }
  0x3d   : > { %v187_v24 = vadd.f32 %v186_v23, %v184_v21  ;;  %s194_s10 = scalar_lea.vmem %s658_s3, %s191_s19  ;;  %v193_v25 = vld [vmem:[%s192_s30] sm:$0x1]  ;;  %s257_s19 = sshll.u32 %s133_s12, 4  ;;  %s609_s19 = int_to_ptr.vmem [resolvable:$true] %s257_s19 }
  0x3e   : > { %v195_v26 = vld [vmem:[%s194_s10] sm:$0x1]  ;;  %v234_v27 = vsel %vm233_vm3, %v232_v22, %v216_v20  ;;  %s326_s23 = sshll.u32 %s515_s27, 7  ;;  %s674_s28 = sand.u32 1, %s450_s24  }
  0x3f   : > { %v196_v28 = vadd.f32 %v195_v26, %v193_v25  ;;  %v219_v29 = vrot.slane %v187_v24, 3  ;;  %s614_s20 = scalar_lea.hbm %s659_s4, %s326_s23  ;;  %s244_s1 = scalar_lea.sflag [#allocation6], %s674_s28 }
  0x40   : > { %s201_s21 = scalar_lea.vmem %s657_s2, %s199_s25  ;;  %s394_s13 = scalar_lea.vmem %s609_s19, 128 }
  0x41   : > { %s203_s11 = scalar_lea.vmem %s658_s3, %s200_s6  ;;  %v202_v30 = vld [vmem:[%s201_s21] sm:$0x1]  ;;  %v222_v33 = vrot.slane %v196_v28, 2  ;;  %v236_v34 = vsel %vm235_vm4, %v234_v27, %v219_v29  ;;  %p395_p6 = scmp.ne.s32.totalorder %s609_s19, %s394_s13 }
  0x42   : > { %v204_v31 = vld [vmem:[%s203_s11] sm:$0x1]  ;;  %s462_s27 = smov [#allocation5]  }
  0x43   : > { %v205_v32 = vadd.f32 %v204_v31, %v202_v30  ;;  %v238_v36 = vsel %vm237_vm5, %v236_v34, %v222_v33  ;;  %p396_p7 = pnand %p395_p6, %p532_p1  ;;  %s398_s29 = sshll.u32 %s462_s27, 4  ;;  %s399_s29 = int_to_ptr.vmem [resolvable:$false] %s398_s29 }
  0x44   : > { %s400_s16 = scalar_lea.vmem %s399_s29, 256  ;;  %p401_p9 = scmp.lt.s32.totalorder %s609_s19, %s399_s29 }
  0x45   : > { %v225_v35 = vrot.slane %v205_v32, 1  ;;  %p397_p8 = pneg %p396_p7  ;;  %p402_p10 = scmp.lt.s32.totalorder %s400_s16, %s394_s13 }
  0x47   : > { %v240_v37 = vsel %vm239_vm6, %v238_v36, %v225_v35  ;;  %p403_p11 = por %p402_p10, %p401_p9 }
  0x48   : > { %242 = vst.msk [vmem:[%s133_s12] sm:$0xff] %vm241_vm7, %v240_v37 }
  0x49   : > { %p404_p12 = pnand %p403_p11, %p397_p8 }
  0x4b   : > { %407 = shalt.err (!%p404_p12)
}
  0x4c   : > { %s408_s15 = scalar_lea.hbm %s614_s20, 128  ;;  %s412_s30 = scalar_lea.hbm %s659_s4, 256 }
  0x4d   : > { %p409_p13 = scmp.ne.s32.totalorder %s614_s20, %s408_s15  ;;  %p413_p4 = scmp.lt.u32.totalorder %s614_s20, %s659_s4 }
  0x4e   : > { %p414_p5 = scmp.lt.u32.totalorder %s412_s30, %s408_s15  ;;  %p416_p7 = scmp.lt.u32.totalorder %s408_s15, %s614_s20 }
  0x4f   : > { %p410_p0 = pnand %p409_p13, %p532_p1 }
  0x50   : > { %p415_p6 = por %p414_p5, %p413_p4 }
  0x51   : > { %p411_p3 = pneg %p410_p0 }
  0x52   : > { %p417_p8 = por %p416_p7, %p415_p6 }
  0x54   : > { %p418_p9 = pnand %p417_p8, %p411_p3 }
  0x56   : > { %421 = shalt.err (!%p418_p9)
}
  0x57   : > { %329 = dma.vmem_to_hbm [thread:$0]  (%p532_p1), %s609_s19, 128, %s614_s20, %s244_s1  }
  0x58 PF: > { %s675_s10 = sld [smem:[#allocation9_spill]]  ;;  %p335_p10 = scmp.ge.s32.totalorder %s458_s26, 2 }
  0x5a   : > { %p332_p11 = pnand %p335_p10, %p536_p2 }
  0x5e   : > { %s269_s18 = sand.u32 1, %s675_s10  }
  0x5f   : > { %s270_s21 = scalar_lea.sflag [#allocation6], %s269_s18 }
  0x60   : > { %441 = dma.done.wait (!%p332_p11), %s270_s21, 128  }
  0x61   : > { %443 = vsyncadd (!%p332_p11), %s270_s21, 4294967168  ;;  %s677_s26 = sld [smem:[#allocation11_spill]]  ;;  %s678_s22 = sld [smem:[#allocation10_spill]] }
  0x62   : > { %s679_s25 = sld [smem:[#allocation12_spill]]  ;;  %s680_s1 = smov %s450_s24 }
  0x67   : > { %p24_p12 = scmp.ge.s32.totalorder %s677_s26, 4   ;;  %s681_s24 = smov %s678_s22 }
  0x69   :  { %26 = sbr.rel (!%p24_p12) target bundleno = 28 (0x1c), region = 76 }
  0x70   :  { %275 = vsyncpa [#allocation6], 1 }
  0x71   :  { %277 = vsyncpa [#allocation6 + $0x1], 1 }

// kernel: _encode_impl.1
= control target key start
LH: loop header
LB: loop body
LE: loop exit
PB: predicated region body
PF: predicated region fallthrough
CT: control target
= control target key end

     0   :  { %s656_s0 = inlined_call_operand.vmem [shape: s32[16], index: 0, kind: input, shape index: {}]   ;;  %s657_s2 = inlined_call_operand.vmem [shape: f32[64,32], index: 2, kind: input, shape index: {}]   ;;  %s658_s3 = inlined_call_operand.vmem [shape: f32[4101,32], index: 3, kind: input, shape index: {}]   ;;  %s659_s4 = inlined_call_operand.hbm [shape: f32[16,32], index: 4, kind: output, shape index: {}]   ;;  %s660_s1 = inlined_call_operand.vmem [shape: s32[16], index: 1, kind: input, shape index: {}]  }
   0x1   :  { %s9_s17 = sshll.u32 %s656_s0, 4  ;;  %s13_s20 = sshll.u32 %s660_s1, 4  ;;  %s10_s17 = int_to_ptr.vmem [resolvable:$true] %s9_s17  ;;  %s14_s20 = int_to_ptr.vmem [resolvable:$true] %s13_s20 }
   0x2   :  { %s370_s21 = scalar_lea.vmem %s10_s17, 16  ;;  %p375_p1 = scmp.lt.s32.totalorder %s10_s17, %s10_s17 }
   0x3   :  { %p371_p0 = scmp.ne.s32.totalorder %s10_s17, %s370_s21  ;;  %p376_p2 = scmp.lt.s32.totalorder %s370_s21, %s370_s21 }
   0x5   :  { %p377_p3 = por %p376_p2, %p375_p1 }
   0x7   :  { %p378_p4 = pnand %p377_p3, %p371_p0 }
   0x9   :  { %381 = shalt.err (!%p378_p4)  }
   0xa   :  { %s460_s22 = smov [#allocation3]   ;;  %s382_s23 = scalar_lea.vmem %s14_s20, 16 }
   0xb   :  { %12 = dma.vmem_to_smem %s10_s17, 16, %s460_s22, [#allocation2] }
   0xc   :  { %p383_p5 = scmp.ne.s32.totalorder %s14_s20, %s382_s23  ;;  %p387_p6 = scmp.lt.s32.totalorder %s14_s20, %s14_s20 }
   0xd   :  { %p388_p7 = scmp.lt.s32.totalorder %s382_s23, %s382_s23 }
   0xf   :  { %p389_p8 = por %p388_p7, %p387_p6 }
  0x11   :  { %p390_p9 = pnand %p389_p8, %p383_p5 }
  0x13   :  { %393 = shalt.err (!%p390_p9)  }
  0x14   :  { %s461_s0 = smov [#allocation4]  }
  0x15   :  { %16 = dma.vmem_to_smem %s14_s20, 16, %s461_s0, [#allocation2] }
  0x16   :  { %438 = dma.done.wait [#allocation2], 32 }
  0x17   :  { %439 = vsyncadd [#allocation2], 4294967264 }
  0x18   :  { %18 = sfence }
  0x19   :  { %19 = vsyncpa [#allocation6], 0 }
  0x1a   :  { %21 = vsyncpa [#allocation6 + $0x1], 0  ;;  %s494_s1 = smov 0   ;;  %s496_s24 = smov 0  }
  0x1b   :  { %s498_s25 = smov 0   ;;  %s500_s26 = smov 0  }
  0x1c LB: > { %666 = sst [smem:[#allocation9_spill]] %s446_s1  ;;  %s515_s27 = sadd.s32 4294967295, %s458_s26   ;;  %s458_s26 = sphi %s500_s26, %s677_s26   ;;  %s454_s25 = sphi %s498_s25, %s679_s25   ;;  %s450_s24 = sphi %s496_s24, %s681_s24   ;;  %s446_s1 = sphi %s494_s1, %s680_s1  }
  0x1d   : > { %667 = sst [smem:[#allocation10_spill]] %s454_s25  ;;  %s320_s28 = sadd.s32 4294967294, %s458_s26  }
  0x1e   : > { %s519_s29 = sadd.s32 1, %s458_s26   ;;  %s76_s30 = sadd.s32 1, %s454_s25 }
  0x1f   : > { %668 = sst [smem:[#allocation11_spill]] %s519_s29  ;;  %s73_s5 = ssub.s32 %s458_s26, %s519_s29 }
  0x20   : > { %p86_p10 = scmp.ne.s32.totalorder %s454_s25, %s450_s24  ;;  %p74_p11 = scmp.eq.s32.totalorder %s73_s5, 0 }
  0x21   : > { %p87_p12 = scmp.eq.s32.totalorder %s515_s27, 1  ;;  %p92_p13 = scmp.ne.s32.totalorder %s450_s24, %s446_s1 }
  0x22   : > { %p93_p0 = scmp.eq.s32.totalorder %s320_s28, 1  ;;  %p322_p3 = scmp.ge.s32.totalorder %s458_s26, 1 }
  0x23   : > { %s530_s6 = scalar_select %p74_p11, %s454_s25, %s76_s30  }
  0x24   : > { %p532_p1 = por %p87_p12, %p86_p10  ;;  %p536_p2 = por %p93_p0, %p92_p13 }
  0x25   : > { %669 = sst [smem:[#allocation12_spill]] %s530_s6  ;;  %p117_p4 = scmp.lt.s32.totalorder %s458_s26, 3 }
  0x26   : > { %s671_s8 = scalar_select %p536_p2, 1, 0 }
  0x27   : > { %p118_p5 = pnand %p322_p3, %p117_p4 }
  0x28   : > { %672 = sst [smem:[#allocation13_spill]] %s671_s8  ;;  %s543_s9 = sshll.u32 (!%p118_p5), %s515_s27, 3  ;;  %vm227_vm0 = vcmask (!%p118_p5), 1040384   ;;  %vm229_vm1 = vcmask (!%p118_p5), 1041408   ;;  %vm231_vm2 = vcmask (!%p118_p5), 1042432   ;;  %vm233_vm3 = vcmask (!%p118_p5), 1043456  }
  0x29   : > { %121 = sbr.rel (%p118_p5) target bundleno = 88 (0x58), region = 28  ;;  %s136_s10 = sld [smem:[#allocation3 + %s543_s9]] (!%p118_p5)  ;;  %vm235_vm4 = vcmask (!%p118_p5), 1044480   ;;  %vm237_vm5 = vcmask (!%p118_p5), 1045504   ;;  %vm239_vm6 = vcmask (!%p118_p5), 1046528   ;;  %vm241_vm7 = vcmask (!%p118_p5), 261120  }
  0x2a   : > { %s137_s12 = sld [smem:[#allocation4 + %s543_s9]] (!%p118_p5)  ;;  %s144_s13 = sadd.s32 (!%p118_p5), 1, %s543_s9 }
  0x2b   : > { %s153_s14 = sadd.s32 (!%p118_p5), 2, %s543_s9  ;;  %s145_s15 = sld [smem:[#allocation3 + %s144_s13]] (!%p118_p5) }
  0x2c   : > { %s146_s16 = sld [smem:[#allocation4 + %s144_s13]] (!%p118_p5)  ;;  %s162_s19 = sadd.s32 (!%p118_p5), 3, %s543_s9 }
  0x2d   : > { %s154_s17 = sld [smem:[#allocation3 + %s153_s14]] (!%p118_p5)  ;;  %s171_s20 = sadd.s32 (!%p118_p5), 4, %s543_s9 }
  0x2e   : > { %s155_s18 = sld [smem:[#allocation4 + %s153_s14]] (!%p118_p5)  ;;  %s180_s25 = sadd.s32 (!%p118_p5), 5, %s543_s9 }
  0x2f   : > { %s138_s23 = scalar_lea.vmem (!%p118_p5), %s657_s2, %s136_s10  ;;  %s163_s0 = sld [smem:[#allocation3 + %s162_s19]] (!%p118_p5) }
  0x30   : > { %s140_s5 = scalar_lea.vmem %s658_s3, %s137_s12  ;;  %s164_s11 = sld [smem:[#allocation4 + %s162_s19]]  ;;  %v139_v0 = vld [vmem:[%s138_s23] sm:$0x1] }
  0x31   : > { %v141_v1 = vld [vmem:[%s140_s5] sm:$0x1]  ;;  %s172_s6 = sld [smem:[#allocation3 + %s171_s20]]  ;;  %s147_s29 = scalar_lea.vmem %s657_s2, %s145_s15 }
  0x32   : > { %s173_s13 = sld [smem:[#allocation4 + %s171_s20]]  ;;  %s149_s10 = scalar_lea.vmem %s658_s3, %s146_s16  ;;  %v148_v2 = vld [vmem:[%s147_s29] sm:$0x1]  ;;  %v142_v4 = vadd.f32 %v141_v1, %v139_v0 }
  0x33   : > { %v150_v3 = vld [vmem:[%s149_s10] sm:$0x1]  ;;  %s156_s12 = scalar_lea.vmem %s657_s2, %s154_s17  ;;  %s189_s15 = sadd.s32 6, %s543_s9 }
  0x34   : > { %s158_s23 = scalar_lea.vmem %s658_s3, %s155_s18  ;;  %v151_v5 = vadd.f32 %v150_v3, %v148_v2  ;;  %v157_v6 = vld [vmem:[%s156_s12] sm:$0x1]  ;;  %s181_s8 = sld [smem:[#allocation3 + %s180_s25]] }
  0x35   : > { %v159_v7 = vld [vmem:[%s158_s23] sm:$0x1]  ;;  %s165_s29 = scalar_lea.vmem %s657_s2, %s163_s0  ;;  %s182_s18 = sld [smem:[#allocation4 + %s180_s25]] }
  0x36   : > { %v160_v8 = vadd.f32 %v159_v7, %v157_v6  ;;  %v166_v9 = vld [vmem:[%s165_s29] sm:$0x1]  ;;  %s167_s30 = scalar_lea.vmem %s658_s3, %s164_s11  ;;  %v207_v10 = vrot.slane %v151_v5, 7  ;;  %s190_s12 = sld [smem:[#allocation3 + %s189_s15]] }
  0x37   : > { %v168_v11 = vld [vmem:[%s167_s30] sm:$0x1]  ;;  %s174_s10 = scalar_lea.vmem %s657_s2, %s172_s6  ;;  %s191_s19 = sld [smem:[#allocation4 + %s189_s15]] }
  0x38   : > { %s176_s0 = scalar_lea.vmem %s658_s3, %s173_s13  ;;  %v210_v12 = vrot.slane %v160_v8, 6  ;;  %v169_v13 = vadd.f32 %v168_v11, %v166_v9  ;;  %v175_v14 = vld [vmem:[%s174_s10] sm:$0x1]  ;;  %v228_v16 = vsel %vm227_vm0, %v142_v4, %v207_v10  ;;  %s673_s11 = sand.u32 1, %s450_s24  }
  0x39   : > { %v177_v15 = vld [vmem:[%s176_s0] sm:$0x1]  ;;  %s586_s28 = sshll.u32 %s673_s11, 3  ;;  %s198_s23 = sadd.s32 7, %s543_s9 }
  0x3a   : > { %v178_v17 = vadd.f32 %v177_v15, %v175_v14  ;;  %v230_v18 = vsel %vm229_vm1, %v228_v16, %v210_v12  ;;  %s199_s25 = sld [smem:[#allocation3 + %s198_s23]]  ;;  %v213_v19 = vrot.slane %v169_v13, 5  ;;  %s183_s13 = scalar_lea.vmem %s657_s2, %s181_s8 }
  0x3b   : > { %s200_s6 = sld [smem:[#allocation4 + %s198_s23]]  ;;  %v184_v21 = vld [vmem:[%s183_s13] sm:$0x1]  ;;  %s185_s15 = scalar_lea.vmem %s658_s3, %s182_s18 }
  0x3c   : > { %v216_v20 = vrot.slane %v178_v17, 4  ;;  %v232_v22 = vsel %vm231_vm2, %v230_v18, %v213_v19  ;;  %v186_v23 = vld [vmem:[%s185_s15] sm:$0x1]  ;;  %s192_s30 = scalar_lea.vmem %s657_s2, %s190_s12  ;;  %s133_s12 = scalar_lea.vmem [#allocation5], %s586_s28 }
  0x3d   : > { %v187_v24 = vadd.f32 %v186_v23, %v184_v21  ;;  %s194_s10 = scalar_lea.vmem %s658_s3, %s191_s19  ;;  %v193_v25 = vld [vmem:[%s192_s30] sm:$0x1]  ;;  %s257_s19 = sshll.u32 %s133_s12, 4  ;;  %s609_s19 = int_to_ptr.vmem [resolvable:$true] %s257_s19 }
  0x3e   : > { %v195_v26 = vld [vmem:[%s194_s10] sm:$0x1]  ;;  %v234_v27 = vsel %vm233_vm3, %v232_v22, %v216_v20  ;;  %s326_s23 = sshll.u32 %s515_s27, 7  ;;  %s674_s28 = sand.u32 1, %s450_s24  }
  0x3f   : > { %v196_v28 = vadd.f32 %v195_v26, %v193_v25  ;;  %v219_v29 = vrot.slane %v187_v24, 3  ;;  %s614_s20 = scalar_lea.hbm %s659_s4, %s326_s23  ;;  %s244_s1 = scalar_lea.sflag [#allocation6], %s674_s28 }
  0x40   : > { %s201_s21 = scalar_lea.vmem %s657_s2, %s199_s25  ;;  %s394_s13 = scalar_lea.vmem %s609_s19, 128 }
  0x41   : > { %s203_s11 = scalar_lea.vmem %s658_s3, %s200_s6  ;;  %v202_v30 = vld [vmem:[%s201_s21] sm:$0x1]  ;;  %v222_v33 = vrot.slane %v196_v28, 2  ;;  %v236_v34 = vsel %vm235_vm4, %v234_v27, %v219_v29  ;;  %p395_p6 = scmp.ne.s32.totalorder %s609_s19, %s394_s13 }
  0x42   : > { %v204_v31 = vld [vmem:[%s203_s11] sm:$0x1]  ;;  %s462_s27 = smov [#allocation5]  }
  0x43   : > { %v205_v32 = vadd.f32 %v204_v31, %v202_v30  ;;  %v238_v36 = vsel %vm237_vm5, %v236_v34, %v222_v33  ;;  %p396_p7 = pnand %p395_p6, %p532_p1  ;;  %s398_s29 = sshll.u32 %s462_s27, 4  ;;  %s399_s29 = int_to_ptr.vmem [resolvable:$false] %s398_s29 }
  0x44   : > { %s400_s16 = scalar_lea.vmem %s399_s29, 256  ;;  %p401_p9 = scmp.lt.s32.totalorder %s609_s19, %s399_s29 }
  0x45   : > { %v225_v35 = vrot.slane %v205_v32, 1  ;;  %p397_p8 = pneg %p396_p7  ;;  %p402_p10 = scmp.lt.s32.totalorder %s400_s16, %s394_s13 }
  0x47   : > { %v240_v37 = vsel %vm239_vm6, %v238_v36, %v225_v35  ;;  %p403_p11 = por %p402_p10, %p401_p9 }
  0x48   : > { %242 = vst.msk [vmem:[%s133_s12] sm:$0xff] %vm241_vm7, %v240_v37 }
  0x49   : > { %p404_p12 = pnand %p403_p11, %p397_p8 }
  0x4b   : > { %407 = shalt.err (!%p404_p12)
}
  0x4c   : > { %s408_s15 = scalar_lea.hbm %s614_s20, 128  ;;  %s412_s30 = scalar_lea.hbm %s659_s4, 256 }
  0x4d   : > { %p409_p13 = scmp.ne.s32.totalorder %s614_s20, %s408_s15  ;;  %p413_p4 = scmp.lt.u32.totalorder %s614_s20, %s659_s4 }
  0x4e   : > { %p414_p5 = scmp.lt.u32.totalorder %s412_s30, %s408_s15  ;;  %p416_p7 = scmp.lt.u32.totalorder %s408_s15, %s614_s20 }
  0x4f   : > { %p410_p0 = pnand %p409_p13, %p532_p1 }
  0x50   : > { %p415_p6 = por %p414_p5, %p413_p4 }
  0x51   : > { %p411_p3 = pneg %p410_p0 }
  0x52   : > { %p417_p8 = por %p416_p7, %p415_p6 }
  0x54   : > { %p418_p9 = pnand %p417_p8, %p411_p3 }
  0x56   : > { %421 = shalt.err (!%p418_p9)
}
  0x57   : > { %329 = dma.vmem_to_hbm [thread:$0]  (%p532_p1), %s609_s19, 128, %s614_s20, %s244_s1  }
  0x58 PF: > { %s675_s10 = sld [smem:[#allocation9_spill]]  ;;  %p335_p10 = scmp.ge.s32.totalorder %s458_s26, 2 }
  0x5a   : > { %p332_p11 = pnand %p335_p10, %p536_p2 }
  0x5e   : > { %s269_s18 = sand.u32 1, %s675_s10  }
  0x5f   : > { %s270_s21 = scalar_lea.sflag [#allocation6], %s269_s18 }
  0x60   : > { %441 = dma.done.wait (!%p332_p11), %s270_s21, 128  }
  0x61   : > { %443 = vsyncadd (!%p332_p11), %s270_s21, 4294967168  ;;  %s677_s26 = sld [smem:[#allocation11_spill]]  ;;  %s678_s22 = sld [smem:[#allocation10_spill]] }
  0x62   : > { %s679_s25 = sld [smem:[#allocation12_spill]]  ;;  %s680_s1 = smov %s450_s24 }
  0x67   : > { %p24_p12 = scmp.ge.s32.totalorder %s677_s26, 4   ;;  %s681_s24 = smov %s678_s22 }
  0x69   :  { %26 = sbr.rel (!%p24_p12) target bundleno = 28 (0x1c), region = 76 }
  0x70   :  { %275 = vsyncpa [#allocation6], 1 }
  0x71   :  { %277 = vsyncpa [#allocation6 + $0x1], 1 }

</bundles_post_ra>
